<compile_context>
chip_gen: v7x
topology: tpu7x:2x2x1
jax: 0.10.0
libtpu: 0.0.40
codegen_flags: <defaults>
</compile_context>

<pallas_src>
import jax
import jax.numpy as jnp
from jax.experimental import pallas as pl
from jax.experimental.pallas import tpu as pltpu


def _round_up(x, m):
    return (x + m - 1) // m * m


def mlp_kernel(x_ref, w1_ref, b1_ref, w2_ref, b2_ref, o_ref):
    # x arrives f32 straight from HBM; cast to bf16 in VMEM so both matmuls
    # take the bf16 MXU path with f32 accumulation.
    x = x_ref[...].astype(jnp.bfloat16)
    # fc1: (TB, D) bf16 @ (D, Hp) bf16 -> f32 accumulate on the MXU
    h = jnp.dot(x, w1_ref[...], preferred_element_type=jnp.float32)
    h = jax.nn.sigmoid(h + b1_ref[...])                       # f32, EUP
    # fc2: (TB, Hp) bf16 @ (Hp, Cp) bf16 -> f32 accumulate
    y = jnp.dot(h.astype(jnp.bfloat16), w2_ref[...],
                preferred_element_type=jnp.float32)
    # bf16 writeback halves output HBM traffic (sigmoid in [0,1]).
    o_ref[...] = jax.nn.sigmoid(y + b2_ref[...]).astype(o_ref.dtype)


def nn_forward(x, w1, b1, w2, b2, *, tile_b=512):
    """x: (B, D) f32; w1: (D, H); b1: (H,); w2: (H, C); b2: (C,) -> (B, C) f32."""
    B, D = x.shape
    H = w1.shape[1]
    C = w2.shape[1]

    # Lane-align the hidden and class feature dims.
    Hp = _round_up(H, 128)
    Cp = _round_up(C, 128)

    # Batch tile: 16-row granularity (bf16 sublane packing for intermediates);
    # if a single tile would swallow the whole batch, split it so the grid has
    # at least two steps and the "parallel" axis shards across v7x's two TCs.
    tb = min(tile_b, _round_up(B, 16))
    if pl.cdiv(B, tb) < 2 and B > 16:
        tb = _round_up(pl.cdiv(B, 2), 16)
    grid = (pl.cdiv(B, tb),)

    # bf16 weights, zero-padded to lane width; biases stay f32.
    # Zero rows H..Hp of w2 make the padded hidden columns (sigmoid(0)=0.5) inert.
    w1_p = jnp.zeros((D, Hp), jnp.bfloat16).at[:, :H].set(w1.astype(jnp.bfloat16))
    b1_p = jnp.zeros((1, Hp), jnp.float32).at[0, :H].set(b1.astype(jnp.float32))
    w2_p = jnp.zeros((Hp, Cp), jnp.bfloat16).at[:H, :C].set(w2.astype(jnp.bfloat16))
    b2_p = jnp.zeros((1, Cp), jnp.float32).at[0, :C].set(b2.astype(jnp.float32))

    # VMEM budget: double-buffered f32 x tile + resident weights + bf16 output
    # tile + intermediates, with ~2x margin; no artificial 32 MiB floor.
    x_tile_bytes = tb * D * 4
    out_tile_bytes = tb * Cp * 2
    w_bytes = D * Hp * 2 + Hp * Cp * 2 + (Hp + Cp) * 4
    interm_bytes = tb * Hp * 6 + tb * Cp * 4      # h (f32 + bf16) + y (f32)
    vmem_needed = 2 * (x_tile_bytes + out_tile_bytes) + 2 * w_bytes + interm_bytes
    vmem_limit = min(max(2 * vmem_needed, 2 * 1024 * 1024), 64 * 1024 * 1024)

    cost = pl.CostEstimate(
        flops=2 * B * (D * Hp + Hp * Cp),
        transcendentals=B * (Hp + Cp),
        bytes_accessed=(B * D * 4                       # f32 x stream
                        + D * Hp * 2 + Hp * Cp * 2      # bf16 weights (resident)
                        + (Hp + Cp) * 4                 # f32 biases
                        + B * Cp * 2),                  # bf16 output writeback
    )

    out_p = pl.pallas_call(
        mlp_kernel,
        out_shape=jax.ShapeDtypeStruct((B, Cp), jnp.bfloat16),
        grid=grid,
        in_specs=[
            pl.BlockSpec((tb, D), lambda i: (i, 0)),    # x tile over batch (f32)
            pl.BlockSpec((D, Hp), lambda i: (0, 0)),    # w1 (resident)
            pl.BlockSpec((1, Hp), lambda i: (0, 0)),    # b1 (resident)
            pl.BlockSpec((Hp, Cp), lambda i: (0, 0)),   # w2 (resident)
            pl.BlockSpec((1, Cp), lambda i: (0, 0)),    # b2 (resident)
        ],
        out_specs=pl.BlockSpec((tb, Cp), lambda i: (i, 0)),
        compiler_params=pltpu.CompilerParams(
            dimension_semantics=("parallel",),
            vmem_limit_bytes=vmem_limit,
        ),
        cost_estimate=cost,
    )(x, w1_p, b1_p, w2_p, b2_p)

    # Strip class padding, back to f32.
    return out_p[:, :C].astype(jnp.float32)


def make_params(key, in_features, hidden, num_classes):
    # Deterministic PyTorch-style init: U(-1/sqrt(fan_in), 1/sqrt(fan_in))
    k1, k2, k3, k4 = jax.random.split(key, 4)
    bound1 = 1.0 / (in_features ** 0.5)
    bound2 = 1.0 / (hidden ** 0.5)
    w1 = jax.random.uniform(k1, (in_features, hidden), jnp.float32,
                            -bound1, bound1)
    b1 = jax.random.uniform(k2, (hidden,), jnp.float32, -bound1, bound1)
    w2 = jax.random.uniform(k3, (hidden, num_classes), jnp.float32,
                            -bound2, bound2)
    b2 = jax.random.uniform(k4, (num_classes,), jnp.float32, -bound2, bound2)
    return w1, b1, w2, b2


if __name__ == "__main__":
    # Small shapes consistent with the module: x is (batch, input_size).
    # batch=100 deliberately does NOT divide the tile to exercise the
    # ragged-last-block path.
    batch = 100
    input_size = 256      # small stand-in for 100**2
    hidden = 50           # matches nn.Linear(input_size, 50)
    num_classes = 4       # matches nn.Linear(50, num_classes)

    key = jax.random.PRNGKey(0)
    kx, kp = jax.random.split(key)
    x = jax.random.normal(kx, (batch, input_size), jnp.float32)
    w1, b1, w2, b2 = make_params(kp, input_size, hidden, num_classes)

    out = nn_forward(x, w1, b1, w2, b2)
    out = jax.block_until_ready(out)

    # Pure-JAX f32 reference; bf16 operands + bf16 writeback -> loose tolerance.
    ref = jax.nn.sigmoid(jax.nn.sigmoid(x @ w1 + b1) @ w2 + b2)
    assert out.shape == (batch, num_classes)
    assert jnp.allclose(out, ref, atol=2e-2, rtol=2e-2), (
        float(jnp.max(jnp.abs(out - ref))))

    print("KERNEL_OK")
</pallas_src>

<mosaic_0001>
module attributes {stable_mosaic.version = 11 : i64} {
  func.func @mlp_kernel(%arg0: i32, %arg1: memref<64x256xf32, #tpu.memory_space<vmem>>, %arg2: memref<256x128xbf16, #tpu.memory_space<vmem>>, %arg3: memref<1x128xf32, #tpu.memory_space<vmem>>, %arg4: memref<128x128xbf16, #tpu.memory_space<vmem>>, %arg5: memref<1x128xf32, #tpu.memory_space<vmem>>, %arg6: memref<64x128xbf16, #tpu.memory_space<vmem>>) attributes {dimension_semantics = [#tpu.dimension_semantics<parallel>], iteration_bounds = array<i64: 2>, scalar_prefetch = 0 : i64, scratch_operands = 0 : i64, tpu.core_type = #tpu.core_type<tc>, window_params = [{transform_indices = @transform_0, window_bounds = array<i64: 64, 256>}, {pipeline_mode = #tpu.pipeline_mode<synchronous>, transform_indices = @transform_1, window_bounds = array<i64: 256, 128>}, {pipeline_mode = #tpu.pipeline_mode<synchronous>, transform_indices = @transform_2, window_bounds = array<i64: 1, 128>}, {pipeline_mode = #tpu.pipeline_mode<synchronous>, transform_indices = @transform_3, window_bounds = array<i64: 128, 128>}, {pipeline_mode = #tpu.pipeline_mode<synchronous>, transform_indices = @transform_4, window_bounds = array<i64: 1, 128>}, {transform_indices = @transform_5, window_bounds = array<i64: 64, 128>}]} {
    %c0 = arith.constant 0 : index
    %c0_0 = arith.constant 0 : index
    %0 = vector.load %arg1[%c0, %c0_0] : memref<64x256xf32, #tpu.memory_space<vmem>>, vector<64x256xf32>
    %1 = arith.truncf %0 : vector<64x256xf32> to vector<64x256xbf16>
    %c0_1 = arith.constant 0 : index
    %c0_2 = arith.constant 0 : index
    %2 = vector.load %arg2[%c0_1, %c0_2] : memref<256x128xbf16, #tpu.memory_space<vmem>>, vector<256x128xbf16>
    %cst = arith.constant dense<0.000000e+00> : vector<64x128xf32>
    %3 = tpu.matmul %1, %2, %cst {dimension_numbers = #tpu.dot_dimension_numbers<[1], [0], [0], [1], [0, 0, 1, 1], [], []>} : vector<64x256xbf16>, vector<256x128xbf16>, vector<64x128xf32> -> vector<64x128xf32>
    %c0_3 = arith.constant 0 : index
    %c0_4 = arith.constant 0 : index
    %4 = vector.load %arg3[%c0_3, %c0_4] : memref<1x128xf32, #tpu.memory_space<vmem>>, vector<1x128xf32>
    %5 = vector.broadcast %4 : vector<1x128xf32> to vector<64x128xf32>
    %6 = arith.addf %3, %5 : vector<64x128xf32>
    %7 = arith.negf %6 : vector<64x128xf32>
    %8 = math.exp %7 : vector<64x128xf32>
    %cst_5 = arith.constant 1.000000e+00 : f32
    %9 = vector.broadcast %cst_5 : f32 to vector<64x128xf32>
    %10 = arith.addf %9, %8 : vector<64x128xf32>
    %11 = arith.divf %9, %10 : vector<64x128xf32>
    %12 = arith.truncf %11 : vector<64x128xf32> to vector<64x128xbf16>
    %c0_6 = arith.constant 0 : index
    %c0_7 = arith.constant 0 : index
    %13 = vector.load %arg4[%c0_6, %c0_7] : memref<128x128xbf16, #tpu.memory_space<vmem>>, vector<128x128xbf16>
    %cst_8 = arith.constant dense<0.000000e+00> : vector<64x128xf32>
    %14 = tpu.matmul %12, %13, %cst_8 {dimension_numbers = #tpu.dot_dimension_numbers<[1], [0], [0], [1], [0, 0, 1, 1], [], []>} : vector<64x128xbf16>, vector<128x128xbf16>, vector<64x128xf32> -> vector<64x128xf32>
    %c0_9 = arith.constant 0 : index
    %c0_10 = arith.constant 0 : index
    %15 = vector.load %arg5[%c0_9, %c0_10] : memref<1x128xf32, #tpu.memory_space<vmem>>, vector<1x128xf32>
    %16 = vector.broadcast %15 : vector<1x128xf32> to vector<64x128xf32>
    %17 = arith.addf %14, %16 : vector<64x128xf32>
    %18 = arith.negf %17 : vector<64x128xf32>
    %19 = math.exp %18 : vector<64x128xf32>
    %cst_11 = arith.constant 1.000000e+00 : f32
    %20 = vector.broadcast %cst_11 : f32 to vector<64x128xf32>
    %21 = arith.addf %20, %19 : vector<64x128xf32>
    %22 = arith.divf %20, %21 : vector<64x128xf32>
    %23 = arith.truncf %22 : vector<64x128xf32> to vector<64x128xbf16>
    %c0_12 = arith.constant 0 : index
    %c0_13 = arith.constant 0 : index
    %24 = vector.load %arg6[%c0_12, %c0_13] : memref<64x128xbf16, #tpu.memory_space<vmem>>, vector<64x128xbf16>
    tpu.vector_store %arg6[%c0_12, %c0_13], %23 {strides = array<i32>} : memref<64x128xbf16, #tpu.memory_space<vmem>>, vector<64x128xbf16>,
    return
  }
  func.func @transform_0(%arg0: i32) -> (i32, i32) {
    %c0_i32 = arith.constant 0 : i32
    %c0_i32_0 = arith.constant 0 : i32
    return %arg0, %c0_i32 : i32, i32
  }
  func.func @transform_1(%arg0: i32) -> (i32, i32) {
    %c0_i32 = arith.constant 0 : i32
    %c0_i32_0 = arith.constant 0 : i32
    %c0_i32_1 = arith.constant 0 : i32
    return %c0_i32, %c0_i32_0 : i32, i32
  }
  func.func @transform_2(%arg0: i32) -> (i32, i32) {
    %c0_i32 = arith.constant 0 : i32
    %c0_i32_0 = arith.constant 0 : i32
    %c0_i32_1 = arith.constant 0 : i32
    return %c0_i32, %c0_i32_0 : i32, i32
  }
  func.func @transform_3(%arg0: i32) -> (i32, i32) {
    %c0_i32 = arith.constant 0 : i32
    %c0_i32_0 = arith.constant 0 : i32
    %c0_i32_1 = arith.constant 0 : i32
    return %c0_i32, %c0_i32_0 : i32, i32
  }
  func.func @transform_4(%arg0: i32) -> (i32, i32) {
    %c0_i32 = arith.constant 0 : i32
    %c0_i32_0 = arith.constant 0 : i32
    %c0_i32_1 = arith.constant 0 : i32
    return %c0_i32, %c0_i32_0 : i32, i32
  }
  func.func @transform_5(%arg0: i32) -> (i32, i32) {
    %c0_i32 = arith.constant 0 : i32
    %c0_i32_0 = arith.constant 0 : i32
    return %arg0, %c0_i32 : i32, i32
  }
}

</mosaic_0001>

<bundles_post_ra>
// kernel: tpu_custom_call.1
= control target key start
LH: loop header
LB: loop body
LE: loop exit
PB: predicated region body
PF: predicated region fallthrough
CT: control target
= control target key end

     0   :  { %10 = vsyncpa [#allocation3], 0  ;;  %s1720_s0 = inlined_call_operand.hbm [shape: f32[100,256], index: 0, kind: input, shape index: {}]   ;;  %s1721_s1 = inlined_call_operand.hbm [shape: bf16[256,128], index: 1, kind: input, shape index: {}]   ;;  %s1722_s2 = inlined_call_operand.vmem [shape: f32[1,128], index: 2, kind: input, shape index: {}]   ;;  %s1723_s3 = inlined_call_operand.hbm [shape: bf16[128,128], index: 3, kind: input, shape index: {}]   ;;  %s1724_s4 = inlined_call_operand.vmem [shape: f32[1,128], index: 4, kind: input, shape index: {}]   ;;  %s1725_s5 = inlined_call_operand.hbm [shape: bf16[100,128], index: 5, kind: output, shape index: {}]  }
   0x1   :  { %12 = vsyncpa [#allocation3 + $0x1], 0 }
   0x2   :  { %13 = vsyncpa [#allocation6], 0 }
   0x3   :  { %14 = vsyncpa [#allocation4], 0 }
   0x4   :  { %16 = vsyncpa [#allocation4 + $0x1], 0  ;;  %s1443_s18 = smov 0   ;;  %s1445_s19 = smov 0  }
   0x5   :  { %s1447_s20 = smov 0   ;;  %s1449_s21 = smov 0  }
   0x6 LB: > { %s1464_s22 = sadd.s32 4294967295, %s1401_s21   ;;  %s904_s23 = sadd.s32 4294967294, %s1401_s21   ;;  %s1401_s21 = sphi %s1449_s21, %s1747_s21   ;;  %s1397_s20 = sphi %s1447_s20, %s1746_s20   ;;  %s1393_s19 = sphi %s1445_s19, %s1745_s19   ;;  %s1389_s18 = sphi %s1443_s18, %s1744_s18  }
   0x7   : > { %s1468_s24 = sadd.s32 1, %s1401_s21   ;;  %s29_s25 = sadd.s32 1, %s1397_s20 }
   0x8   : > { %s26_s26 = ssub.s32 %s1401_s21, %s1468_s24  ;;  %p36_p0 = scmp.ne.s32.totalorder %s1397_s20, %s1393_s19 }
   0x9   : > { %p27_p1 = scmp.eq.s32.totalorder %s26_s26, 0  ;;  %p37_p2 = scmp.eq.s32.totalorder %s1401_s21, 0 }
   0xa   : > { %p42_p3 = scmp.ne.s32.totalorder %s1393_s19, %s1389_s18  ;;  %p1726_p4 = scmp.eq.s32.totalorder %s1464_s22, 0 }
   0xb   : > { %s1480_s27 = scalar_select %p27_p1, %s1397_s20, %s29_s25  }
   0xc   : > { %p1482_p5 = por %p37_p2, %p36_p0  ;;  %p1488_p6 = por %p1726_p4, %p42_p3 }
   0xd   : > { %1729 = sst [smem:[#allocation12_spill]] %s1480_s27  ;;  %p150_p7 = scmp.eq.s32.totalorder %s1464_s22, 1 }
   0xe   : > { %s1730_s28 = scalar_select %p1482_p5, 1, 0 }
   0xf   : > { %s1731_s29 = scalar_select %p1488_p6, 1, 0 }
  0x10   : > { %p156_p8 = scmp.eq.s32.totalorder %s904_s23, 1  ;;  %p905_p9 = scmp.ge.s32.totalorder %s1401_s21, 1 }
  0x11   : > { %p163_p10 = scmp.lt.s32.totalorder %s1401_s21, 3  ;;  %p1495_p11 = por %p150_p7, %p36_p0 }
  0x12   : > { %p1499_p12 = por %p156_p8, %p42_p3  ;;  %s1403_s8 = smov [#allocation5]  }
  0x13   : > { %s1732_s30 = scalar_select %p1495_p11, 1, 0 }
  0x14   : > { %s1733_s6 = scalar_select %p1499_p12, 1, 0 }
  0x15   : > { %p1503_p13 = pnand %p905_p9, %p163_p10  ;;  %s175_s9 = sshll.u32 %s1403_s8, 4  ;;  %s176_s9 = int_to_ptr.vmem [resolvable:$true] %s175_s9 }
  0x16   : > { %s1404_s11 = smov [#allocation7]   ;;  %s1247_s15 = scalar_lea.hbm %s1721_s1, 2048 }
  0x17   : > { %s1734_s7 = scalar_select %p1503_p13, 1, 0 }
  0x18   : > { %p1103_p1 = pneg %p1503_p13  ;;  %s191_s12 = sshll.u32 %s1404_s11, 4  ;;  %s1515_s12 = int_to_ptr.vmem [resolvable:$true] %s191_s12 }
  0x19   : > { %p1248_p0 = scmp.ne.s32.totalorder %s1721_s1, %s1247_s15  ;;  %p1254_p9 = scmp.lt.u32.totalorder %s1247_s15, %s1721_s1 }
  0x1a   : > { %p1511_p2 = pnand %p1103_p1, %p1726_p4 }
  0x1c   : > { %p1249_p3 = pneg %p1511_p2 }
  0x1e   : > { %p1250_p7 = pnand %p1249_p3, %p1248_p0 }
  0x20   : > { %p1251_p8 = pneg %p1250_p7 }
  0x22   : > { %p1256_p10 = pnand %p1254_p9, %p1251_p8 }
  0x24   : > { %1259 = shalt.err (!%p1256_p10)
}
  0x25   : > { %s1260_s26 = scalar_lea.vmem %s176_s9, 2048  ;;  %p1268_p11 = scmp.lt.s32.totalorder %s176_s9, %s176_s9 }
  0x26   : > { %p1261_p1 = scmp.ne.s32.totalorder %s176_s9, %s1260_s26  ;;  %p1269_p6 = scmp.lt.s32.totalorder %s1260_s26, %s1260_s26 }
  0x28   : > { %p1263_p4 = pnand %p1261_p1, %p1249_p3  ;;  %p1270_p13 = por %p1269_p6, %p1268_p11 }
  0x2a   : > { %p1264_p12 = pneg %p1263_p4 }
  0x2c   : > { %p1271_p5 = pnand %p1270_p13, %p1264_p12 }
  0x2e   : > { %1274 = shalt.err (!%p1271_p5)
}
  0x2f   : > { %s1405_s8 = smov 64   ;;  %s1406_s11 = smov 4  }
  0x30   : > { %1106 = dma.hbm_to_vmem [thread:$0]  (!%p1511_p2), %s1721_s1, 2048, %s176_s9, [#allocation6], %s1405_s8, %s1405_s8, %s1406_s11  }
  0x31   : > { %s1275_s17 = scalar_lea.hbm %s1723_s3, 1024 }
  0x32   : > { %p1276_p4 = scmp.ne.s32.totalorder %s1723_s3, %s1275_s17  ;;  %p1282_p11 = scmp.lt.u32.totalorder %s1275_s17, %s1723_s3 }
  0x34   : > { %p1278_p5 = pnand %p1276_p4, %p1249_p3 }
  0x36   : > { %p1279_p6 = pneg %p1278_p5 }
  0x38   : > { %p1284_p12 = pnand %p1282_p11, %p1279_p6 }
  0x3a   : > { %1287 = shalt.err (!%p1284_p12)
}
  0x3b   : > { %s1288_s9 = scalar_lea.vmem %s1515_s12, 1024  ;;  %p1296_p8 = scmp.lt.s32.totalorder %s1515_s12, %s1515_s12 }
  0x3c   : > { %p1289_p13 = scmp.ne.s32.totalorder %s1515_s12, %s1288_s9  ;;  %p1297_p9 = scmp.lt.s32.totalorder %s1288_s9, %s1288_s9 }
  0x3e   : > { %p1291_p0 = pnand %p1289_p13, %p1249_p3  ;;  %p1298_p10 = por %p1297_p9, %p1296_p8 }
  0x40   : > { %p1292_p7 = pneg %p1291_p0 }
  0x42   : > { %p1299_p1 = pnand %p1298_p10, %p1292_p7 }
  0x44   : > { %1302 = shalt.err (!%p1299_p1)
}
  0x45   : > { %1109 = dma.hbm_to_vmem [thread:$0]  (!%p1511_p2), %s1723_s3, 1024, %s1515_s12, [#allocation6], %s1405_s8, %s1405_s8, %s1406_s11  }
  0x46   : > { %p908_p4 = scmp.ge.s32.totalorder %s1401_s21, 2 }
  0x47   : > { %p1736_p3 = scmp.ne.s32.totalorder (!%p908_p4), %s1730_s28, 0 }
  0x48   : > { %204 = sbr.rel (%p908_p4) target bundleno = 114 (0x72), region = 32 }
  0x4f   : > { %207 = sbr.rel (!%p1736_p3) target bundleno = 114 (0x72), region = 36  ;;  %s208_s14 = sand.u32 (%p1736_p3), 1, %s1397_s20  }
  0x50   : > { %s910_s15 = sshll.u32 (%p1736_p3), %s1401_s21, 3  ;;  %s909_s16 = sshll.u32 (%p1736_p3), %s208_s14, 7 }
  0x51   : > { %s214_s17 = ssub.s32 (%p1736_p3), 13, %s910_s15  ;;  %s1574_s8 = scalar_lea.sflag (%p1736_p3), [#allocation3], %s208_s14 }
  0x52   : > { %p215_p5 = scmp.lt.s32.totalorder (%p1736_p3), %s214_s17, 8  ;;  %s212_s11 = scalar_lea.vmem (%p1736_p3), [#allocation2], %s909_s16 }
  0x56   : > { %s1749_s17 = smov (!%p215_p5, %s214_s17), 8 }
  0x57   : > { %s1571_s10 = sshll.u32 %s1749_s17, 8 }
  0x58   : > { %s220_s12 = ssub.s32 2048, %s1571_s10 }
  0x59   : > { %221 = vsyncadd %s1574_s8, %s220_s12  ;;  %p913_p2 = scmp.ne.s32.totalorder %s1571_s10, 0  ;;  %s984_s28 = sshll.u32 %s1401_s21, 11 }
  0x5a   : > { %s1582_s26 = scalar_lea.hbm %s1720_s0, %s984_s28  ;;  %s227_s9 = sshll.u32 %s212_s11, 4  ;;  %s1584_s9 = int_to_ptr.vmem [resolvable:$true] %s227_s9 }
  0x5b   : > { %s1303_s27 = scalar_lea.hbm %s1582_s26, %s1571_s10  ;;  %s1307_s15 = scalar_lea.hbm %s1720_s0, 3328 }
  0x5c   : > { %p1304_p6 = scmp.ne.s32.totalorder %s1582_s26, %s1303_s27  ;;  %p1308_p13 = scmp.lt.u32.totalorder %s1582_s26, %s1720_s0 }
  0x5d   : > { %p1309_p0 = scmp.lt.u32.totalorder %s1307_s15, %s1303_s27  ;;  %p1311_p8 = scmp.lt.u32.totalorder %s1303_s27, %s1582_s26 }
  0x5e   : > { %p1305_p11 = pnand %p1304_p6, %p913_p2 }
  0x5f   : > { %p1310_p7 = por %p1309_p0, %p1308_p13 }
  0x60   : > { %p1306_p12 = pneg %p1305_p11 }
  0x61   : > { %p1312_p9 = por %p1311_p8, %p1310_p7 }
  0x63   : > { %p1313_p10 = pnand %p1312_p9, %p1306_p12 }
  0x65   : > { %1316 = shalt.err (!%p1313_p10)
}
  0x66   : > { %s1317_s12 = scalar_lea.vmem %s1584_s9, %s1571_s10  ;;  %s1407_s11 = smov [#allocation2]  }
  0x67   : > { %p1318_p1 = scmp.ne.s32.totalorder %s1584_s9, %s1317_s12  ;;  %s1321_s28 = sshll.u32 %s1407_s11, 4  ;;  %s1322_s28 = int_to_ptr.vmem [resolvable:$false] %s1321_s28 }
  0x68   : > { %s1323_s23 = scalar_lea.vmem %s1322_s28, 4096  ;;  %p1324_p6 = scmp.lt.s32.totalorder %s1584_s9, %s1322_s28 }
  0x69   : > { %p1319_p3 = pnand %p1318_p1, %p913_p2  ;;  %p1325_p11 = scmp.lt.s32.totalorder %s1323_s23, %s1317_s12 }
  0x6b   : > { %p1320_p5 = pneg %p1319_p3  ;;  %p1326_p13 = por %p1325_p11, %p1324_p6 }
  0x6d   : > { %p1327_p0 = pnand %p1326_p13, %p1320_p5 }
  0x6f   : > { %1330 = shalt.err (!%p1327_p0)
}
  0x70   : > { %s1408_s25 = smov 256   ;;  %s1409_s27 = smov 16  }
  0x71   : > { %233 = dma.hbm_to_vmem [thread:$0]  (%p913_p2), %s1582_s26, %s1571_s10, %s1584_s9, %s1574_s8, %s1408_s25, %s1408_s25, %s1409_s27  }
  0x72 PF: > { %p1737_p12 = scmp.ne.s32.totalorder %s1734_s7, 0 }
  0x73   : > { %s1614_s13 = sand.u32 (!%p1737_p12), 1, %s1393_s19   ;;  %p1738_p7 = scmp.ne.s32.totalorder (!%p1737_p12), %s1731_s29, 0 }
  0x74   : > { %239 = sbr.rel (%p1737_p12) target bundleno = 706 (0x2c2), region = 40  ;;  %s919_s14 = sshll.u32 (!%p1737_p12), %s1614_s13, 7 }
  0x75   : > { %s242_s15 = scalar_lea.sflag (!%p1737_p12), [#allocation3], %s1614_s13  ;;  %s1618_s16 = scalar_lea.vmem (!%p1737_p12), [#allocation2], %s919_s14 }
  0x7b   : > { %1376 = dma.done.wait (%p1738_p7), %s242_s15, 2048  }
  0x7c   : > { %1378 = vsyncadd (%p1738_p7), %s242_s15, 4294965248  ;;  %p1739_p2 = scmp.eq.s32.totalorder %s1464_s22, 0 }
  0x7e   : > { %1380 = dma.done.wait (%p1739_p2), [#allocation6], 3072   ;;  %p1740_p8 = pmov %p1739_p2 }
  0x7f   : > { %v1159_v0 = vld [vmem:[#allocation5 + $0x40] sm:$0xff]   ;;  %v1161_v2 = vld [vmem:[#allocation5 + $0x48] sm:$0xff]   ;;  %v1163_v4 = vld [vmem:[#allocation5 + $0x50] sm:$0xff]   ;;  %s922_s26 = sshll.u32 %s1614_s13, 5  ;;  %s793_s17 = scalar_lea.sflag [#allocation4], %s1614_s13 }
  0x80   : > { %1382 = vsyncadd (%p1740_p8), [#allocation6], 4294964224  ;;  %v1160_v1 = vld [vmem:[#allocation5] sm:$0xff]   ;;  %1017 = vmatprep.subr.bf16.mxu0 %v1159_v0  ;;  %v1162_v3 = vld [vmem:[#allocation5 + $0x8] sm:$0xff]   ;;  %s1651_s9 = scalar_lea.vmem [#allocation8], %s922_s26  ;;  %p1741_p9 = scmp.ne.s32.totalorder %s1732_s30, 0 }
  0x81   : > { %1018 = vmatpush3.bf16.msra.mxu0 %v1160_v1  ;;  %v1164_v5 = vld [vmem:[#allocation5 + $0x10] sm:$0xff]   ;;  %v1165_v6 = vld [vmem:[#allocation5 + $0x58] sm:$0xff]   ;;  %v1167_v8 = vld [vmem:[#allocation5 + $0x60] sm:$0xff]   ;;  %s974_s12 = sshll.u32 (%p1741_p9), %s1464_s22, 3 }
  0x82   : > { %1019 = vmatprep.subr.bf16.mxu0 %v1161_v2  ;;  %v1166_v7 = vld [vmem:[#allocation5 + $0x18] sm:$0xff]   ;;  %v1168_v9 = vld [vmem:[#allocation5 + $0x20] sm:$0xff]   ;;  %v1169_v10 = vld [vmem:[#allocation5 + $0x68] sm:$0xff]   ;;  %s801_s11 = ssub.s32 (%p1741_p9), 13, %s974_s12 }
  0x83   : > { %v293_v11 = vld [vmem:[%s1618_s16 + $0x8] sm:$0xff]  ;;  %v295_v12 = vld [vmem:[%s1618_s16 + $0x18] sm:$0xff]  ;;  %v1171_v15 = vld [vmem:[#allocation5 + $0x70] sm:$0xff]   ;;  %p802_p10 = scmp.lt.s32.totalorder (%p1741_p9), %s801_s11, 8 }
  0x84   : > { %v309_v13 = vpack.c.bf16 %v295_v12, %v293_v11  ;;  %v1170_v14 = vld [vmem:[#allocation5 + $0x28] sm:$0xff]   ;;  %v1172_v16 = vld [vmem:[#allocation5 + $0x30] sm:$0xff]   ;;  %v1173_v17 = vld [vmem:[#allocation5 + $0x78] sm:$0xff]  }
  0x85   : > { %1020 = vmatpush3.bf16.msra.mxu0 %v1162_v3  ;;  %v1174_v18 = vld [vmem:[#allocation5 + $0x38] sm:$0xff]   ;;  %v292_v19 = vld [vmem:[%s1618_s16] sm:$0xff]  ;;  %v294_v20 = vld [vmem:[%s1618_s16 + $0x10] sm:$0xff] }
  0x86   : > { %1021 = vmatprep.subr.bf16.mxu0 %v1163_v4  ;;  %483 = vmatprep.mubr.bf16.mxu0 %v309_v13  ;;  %v297_v21 = vld [vmem:[%s1618_s16 + $0x28] sm:$0xff]  ;;  %v299_v22 = vld [vmem:[%s1618_s16 + $0x38] sm:$0xff]  ;;  %v308_v23 = vpack.c.bf16 %v294_v20, %v292_v19  ;;  %v296_v25 = vld [vmem:[%s1618_s16 + $0x20] sm:$0xff] }
  0x87   : > { %v311_v24 = vpack.c.bf16 %v299_v22, %v297_v21  ;;  %v298_v26 = vld [vmem:[%s1618_s16 + $0x30] sm:$0xff]  ;;  %v301_v27 = vld [vmem:[%s1618_s16 + $0x48] sm:$0xff]  ;;  %v303_v28 = vld [vmem:[%s1618_s16 + $0x58] sm:$0xff] }
  0x88   : > { %v310_v29 = vpack.c.bf16 %v298_v26, %v296_v25  ;;  %v313_v30 = vpack.c.bf16 %v303_v28, %v301_v27  ;;  %v300_v31 = vld [vmem:[%s1618_s16 + $0x40] sm:$0xff]  ;;  %v302_v32 = vld [vmem:[%s1618_s16 + $0x50] sm:$0xff]  ;;  %v305_v33 = vld [vmem:[%s1618_s16 + $0x68] sm:$0xff] }
  0x89   : > { %1022 = vmatpush3.bf16.msra.mxu0 %v1164_v5  ;;  %v307_v34 = vld [vmem:[%s1618_s16 + $0x78] sm:$0xff]  ;;  %v312_v35 = vpack.c.bf16 %v302_v32, %v300_v31  ;;  %v304_v37 = vld [vmem:[%s1618_s16 + $0x60] sm:$0xff]  ;;  %v306_v38 = vld [vmem:[%s1618_s16 + $0x70] sm:$0xff] }
  0x8a   : > { %1023 = vmatprep.subr.bf16.mxu0 %v1165_v6  ;;  %v315_v36 = vpack.c.bf16 %v307_v34, %v305_v33  ;;  %v314_v39 = vpack.c.bf16 %v306_v38, %v304_v37  ;;  %v1175_v40 = vld [vmem:[#allocation7] sm:$0xff]   ;;  %v1176_v41 = vld [vmem:[#allocation7 + $0x8] sm:$0xff]   ;;  %v1177_v42 = vld [vmem:[#allocation7 + $0x10] sm:$0xff]  }
  0x8b   : > { %1069 = vmatprep.subr.bf16.mxu1 %v1175_v40  ;;  %v1178_v43 = vld [vmem:[#allocation7 + $0x18] sm:$0xff]   ;;  %v1179_v44 = vld [vmem:[#allocation7 + $0x20] sm:$0xff]   ;;  %v1180_v45 = vld [vmem:[#allocation7 + $0x28] sm:$0xff]  }
  0x8c   : > { %1070 = vmatpush3.bf16.msra.mxu1 %v1175_v40  ;;  %v1181_v46 = vld [vmem:[#allocation7 + $0x30] sm:$0xff]   ;;  %v1182_v47 = vld [vmem:[#allocation7 + $0x38] sm:$0xff]   ;;  %v923_v49 = vld [vmem:[%s1722_s2] ss:$0 sm:$0xff] }
  0x8d   : > { %1024 = vmatpush3.bf16.msra.mxu0 %v1166_v7  ;;  %1071 = vmatprep.subr.bf16.mxu1 %v1176_v41 }
  0x8e   : > { %1025 = vmatprep.subr.bf16.mxu0 %v1167_v8 }
  0x90   : > { %1072 = vmatpush3.bf16.msra.mxu1 %v1176_v41 }
  0x91   : > { %1026 = vmatpush3.bf16.msra.mxu0 %v1168_v9  ;;  %1073 = vmatprep.subr.bf16.mxu1 %v1177_v42 }
  0x92   : > { %1027 = vmatprep.subr.bf16.mxu0 %v1169_v10 }
  0x94   : > { %1074 = vmatpush3.bf16.msra.mxu1 %v1177_v42 }
  0x95   : > { %1028 = vmatpush3.bf16.msra.mxu0 %v1170_v14  ;;  %1075 = vmatprep.subr.bf16.mxu1 %v1178_v43 }
  0x96   : > { %1029 = vmatprep.subr.bf16.mxu0 %v1171_v15 }
  0x98   : > { %1076 = vmatpush3.bf16.msra.mxu1 %v1178_v43 }
  0x99   : > { %1030 = vmatpush3.bf16.msra.mxu0 %v1172_v16  ;;  %1077 = vmatprep.subr.bf16.mxu1 %v1179_v44 }
  0x9a   : > { %1031 = vmatprep.subr.bf16.mxu0 %v1173_v17 }
  0x9c   : > { %1078 = vmatpush3.bf16.msra.mxu1 %v1179_v44 }
  0x9d   : > { %1032 = vmatpush3.bf16.msra.mxu0 %v1174_v18  ;;  %1079 = vmatprep.subr.bf16.mxu1 %v1180_v45 }
  0xa0   : > { %484 = vmatmul.mubr.bf16.vlgmr.msra.gmra.mrb[0].mxu0 %v308_v23  ;;  %1080 = vmatpush3.bf16.msra.mxu1 %v1180_v45 }
  0xa1   : > { %491 = vmatprep.mubr.bf16.mxu0 %v311_v24  ;;  %1081 = vmatprep.subr.bf16.mxu1 %v1181_v46 }
  0xa4   : > { %1082 = vmatpush3.bf16.msra.mxu1 %v1181_v46 }
  0xa5   : > { %1083 = vmatprep.subr.bf16.mxu1 %v1182_v47 }
  0xa8   : > { %492 = vmatmul.mubr.bf16.gmra.mrb[4].mxu0 %v310_v29  ;;  %1084 = vmatpush3.bf16.msra.mxu1 %v1182_v47 }
  0xa9   : > { %499 = vmatprep.mubr.bf16.mxu0 %v313_v30 }
  0xb0   : > { %500 = vmatmul.mubr.bf16.gmra.mrb[8].mxu0 %v312_v35 }
  0xb1   : > { %507 = vmatprep.mubr.bf16.mxu0 %v315_v36 }
  0xb8   : > { %508 = vmatmul.mubr.bf16.gmra.mrb[12].mxu0 %v314_v39 }
 0x173   : > { %v1033_v48 = vpop.f32.mrb[0].mxu0 }
 0x174   : > { %v1034_v50 = vpop.f32.mrb[1].mxu0 }
 0x175   : > { %v1035_v51 = vadd.f32 %v1034_v50, %v1033_v48  ;;  %v1036_v52 = vpop.f32.mrb[2].mxu0 }
 0x176   : > { %v1037_v53 = vpop.f32.mrb[3].mxu0 }
 0x177   : > { %v486_v54 = vadd.f32 %v1035_v51, %v923_v49  ;;  %v1038_v55 = vadd.f32 %v1037_v53, %v1036_v52  ;;  %v948_v53 = vld [vmem:[%s1724_s4] ss:$0 sm:$0xff] }
 0x179   : > { %v940_v56 = vmul.f32 -1.442695, %v486_v54  ;;  %v489_v57 = vadd.f32 %v1038_v55, %v923_v49 }
 0x17b   : > { %1183 = vpow2.f32 %v940_v56  ;;  %v941_v58 = vmul.f32 -1.442695, %v489_v57  ;;  %v1039_v59 = vpop.f32.mrb[4].mxu0 }
 0x17c   : > { %v1040_v60 = vpop.f32.mrb[5].mxu0 }
 0x17d   : > { %1185 = vpow2.f32 %v941_v58  ;;  %v1041_v61 = vadd.f32 %v1040_v60, %v1039_v59  ;;  %v1042_v62 = vpop.f32.mrb[6].mxu0 }
 0x17e   : > { %v1043_v63 = vpop.f32.mrb[7].mxu0 }
 0x17f   : > { %v494_v0 = vadd.f32 %v1041_v61, %v923_v49  ;;  %v1044_v1 = vadd.f32 %v1043_v63, %v1042_v62 }
 0x181   : > { %v942_v2 = vmul.f32 -1.442695, %v494_v0  ;;  %v497_v3 = vadd.f32 %v1044_v1, %v923_v49 }
 0x183   : > { %1187 = vpow2.f32 %v942_v2  ;;  %v943_v4 = vmul.f32 -1.442695, %v497_v3  ;;  %v1045_v5 = vpop.f32.mrb[8].mxu0 }
 0x184   : > { %v1046_v6 = vpop.f32.mrb[9].mxu0 }
 0x185   : > { %v1184_v7 = vpop.eup %1183  ;;  %1189 = vpow2.f32 %v943_v4  ;;  %v1047_v8 = vadd.f32 %v1046_v6, %v1045_v5  ;;  %v1048_v9 = vpop.f32.mrb[10].mxu0 }
 0x186   : > { %v540_v10 = vadd.f32 1.0, %v1184_v7  ;;  %v1049_v11 = vpop.f32.mrb[11].mxu0 }
 0x187   : > { %v1186_v12 = vpop.eup %1185  ;;  %v502_v13 = vadd.f32 %v1047_v8, %v923_v49  ;;  %v1050_v14 = vadd.f32 %v1049_v11, %v1048_v9 }
 0x188   : > { %v541_v15 = vadd.f32 1.0, %v1186_v12  ;;  %1191 = vrcp.f32 %v540_v10 }
 0x189   : > { %v944_v16 = vmul.f32 -1.442695, %v502_v13  ;;  %v505_v17 = vadd.f32 %v1050_v14, %v923_v49 }
 0x18a   : > { %1193 = vrcp.f32 %v541_v15 }
 0x18b   : > { %1195 = vpow2.f32 %v944_v16  ;;  %v945_v18 = vmul.f32 -1.442695, %v505_v17  ;;  %v1051_v19 = vpop.f32.mrb[12].mxu0 }
 0x18c   : > { %v1052_v20 = vpop.f32.mrb[13].mxu0 }
 0x18d   : > { %v1188_v21 = vpop.eup %1187  ;;  %1197 = vpow2.f32 %v945_v18  ;;  %v1053_v22 = vadd.f32 %v1052_v20, %v1051_v19  ;;  %v1054_v23 = vpop.f32.mrb[14].mxu0 }
 0x18e   : > { %v542_v24 = vadd.f32 1.0, %v1188_v21  ;;  %v1055_v25 = vpop.f32.mrb[15].mxu0 }
 0x18f   : > { %v1190_v26 = vpop.eup %1189  ;;  %v510_v27 = vadd.f32 %v1053_v22, %v923_v49  ;;  %v1056_v28 = vadd.f32 %v1055_v25, %v1054_v23 }
 0x190   : > { %v543_v29 = vadd.f32 1.0, %v1190_v26  ;;  %1199 = vrcp.f32 %v542_v24 }
 0x191   : > { %v946_v30 = vmul.f32 -1.442695, %v510_v27  ;;  %v513_v31 = vadd.f32 %v1056_v28, %v923_v49 }
 0x192   : > { %1201 = vrcp.f32 %v543_v29  ;;  %v1192_v32 = vpop.eup %1191 }
 0x193   : > { %1203 = vpow2.f32 %v946_v30  ;;  %v947_v33 = vmul.f32 -1.442695, %v513_v31 }
 0x194   : > { %v1194_v34 = vpop.eup %1193 }
 0x195   : > { %v1196_v35 = vpop.eup %1195  ;;  %1205 = vpow2.f32 %v947_v33  ;;  %v564_v36 = vpack.c.bf16 %v1194_v34, %v1192_v32 }
 0x196   : > { %v544_v37 = vadd.f32 1.0, %v1196_v35 }
 0x197   : > { %v1198_v38 = vpop.eup %1197  ;;  %1085 = vmatprep.mubr.bf16.mxu1 %v564_v36 }
 0x198   : > { %v545_v39 = vadd.f32 1.0, %v1198_v38  ;;  %1207 = vrcp.f32 %v544_v37 }
 0x19a   : > { %1209 = vrcp.f32 %v545_v39  ;;  %v1200_v40 = vpop.eup %1199 }
 0x19c   : > { %v1202_v41 = vpop.eup %1201 }
 0x19d   : > { %v1204_v42 = vpop.eup %1203  ;;  %v565_v43 = vpack.c.bf16 %v1202_v41, %v1200_v40 }
 0x19e   : > { %v546_v44 = vadd.f32 1.0, %v1204_v42 }
 0x19f   : > { %v1206_v45 = vpop.eup %1205  ;;  %1086 = vmatmul.mubr.bf16.vlgmr.msra.gmra.mrb[0].mxu1 %v565_v43 }
 0x1a0   : > { %v547_v46 = vadd.f32 1.0, %v1206_v45  ;;  %1211 = vrcp.f32 %v546_v44 }
 0x1a2   : > { %1213 = vrcp.f32 %v547_v46  ;;  %v1208_v47 = vpop.eup %1207 }
 0x1a4   : > { %v1210_v48 = vpop.eup %1209 }
 0x1a5   : > { %v566_v49 = vpack.c.bf16 %v1210_v48, %v1208_v47 }
 0x1a7   : > { %1089 = vmatprep.mubr.bf16.mxu1 %v566_v49 }
 0x1aa   : > { %v1212_v50 = vpop.eup %1211 }
 0x1ac   : > { %v1214_v51 = vpop.eup %1213 }
 0x1ad   : > { %v567_v52 = vpack.c.bf16 %v1214_v51, %v1212_v50 }
 0x1af   : > { %1090 = vmatmul.mubr.bf16.gmra.mrb[4].mxu1 %v567_v52 }
 0x272   : > { %v1087_v54 = vpop.f32.mrb[0].mxu1 }
 0x273   : > { %v682_v55 = vadd.f32 %v1087_v54, %v948_v53  ;;  %v673_v56 = vpop.f32.mrb[1].mxu1 }
 0x274   : > { %v674_v57 = vadd.f32 %v948_v53, %v673_v56  ;;  %v1088_v58 = vpop.f32.mrb[2].mxu1 }
 0x275   : > { %v959_v59 = vmul.f32 -1.442695, %v682_v55  ;;  %v685_v60 = vadd.f32 %v1088_v58, %v948_v53  ;;  %v676_v61 = vpop.f32.mrb[3].mxu1 }
 0x276   : > { %v957_v62 = vmul.f32 -1.442695, %v674_v57  ;;  %v677_v63 = vadd.f32 %v948_v53, %v676_v61 }
 0x277   : > { %1215 = vpow2.f32 %v959_v59  ;;  %v960_v0 = vmul.f32 -1.442695, %v685_v60 }
 0x278   : > { %1217 = vpow2.f32 %v957_v62  ;;  %v958_v1 = vmul.f32 -1.442695, %v677_v63 }
 0x279   : > { %1219 = vpow2.f32 %v960_v0 }
 0x27a   : > { %1221 = vpow2.f32 %v958_v1 }
 0x281   : > { %v1216_v2 = vpop.eup %1215 }
 0x282   : > { %v1218_v3 = vpop.eup %1217  ;;  %v730_v4 = vadd.f32 1.0, %v1216_v2  ;;  %v1091_v5 = vpop.f32.mrb[4].mxu1 }
 0x283   : > { %v1220_v6 = vpop.eup %1219  ;;  %v728_v7 = vadd.f32 1.0, %v1218_v3  ;;  %v698_v8 = vadd.f32 %v1091_v5, %v948_v53  ;;  %v689_v9 = vpop.f32.mrb[5].mxu1 }
 0x284   : > { %v1222_v10 = vpop.eup %1221  ;;  %1223 = vrcp.f32 %v730_v4  ;;  %v731_v11 = vadd.f32 1.0, %v1220_v6  ;;  %v690_v12 = vadd.f32 %v948_v53, %v689_v9  ;;  %v1092_v13 = vpop.f32.mrb[6].mxu1 }
 0x285   : > { %1225 = vrcp.f32 %v728_v7  ;;  %v729_v14 = vadd.f32 1.0, %v1222_v10  ;;  %v963_v15 = vmul.f32 -1.442695, %v698_v8  ;;  %v701_v16 = vadd.f32 %v1092_v13, %v948_v53  ;;  %v692_v17 = vpop.f32.mrb[7].mxu1 }
 0x286   : > { %1227 = vrcp.f32 %v731_v11  ;;  %v961_v18 = vmul.f32 -1.442695, %v690_v12  ;;  %v693_v19 = vadd.f32 %v948_v53, %v692_v17 }
 0x287   : > { %1229 = vrcp.f32 %v729_v14  ;;  %v964_v20 = vmul.f32 -1.442695, %v701_v16 }
 0x288   : > { %1231 = vpow2.f32 %v963_v15  ;;  %v962_v21 = vmul.f32 -1.442695, %v693_v19 }
 0x289   : > { %1233 = vpow2.f32 %v961_v18 }
 0x28a   : > { %1235 = vpow2.f32 %v964_v20 }
 0x28b   : > { %1237 = vpow2.f32 %v962_v21 }
 0x28e   : > { %v1224_v22 = vpop.eup %1223 }
 0x28f   : > { %v1226_v23 = vpop.eup %1225 }
 0x290   : > { %v1228_v24 = vpop.eup %1227 }
 0x291   : > { %v1230_v25 = vpop.eup %1229  ;;  %v1002_v26 = vpack.c.bf16 %v1228_v24, %v1224_v22 }
 0x292   : > { %v1232_v27 = vpop.eup %1231  ;;  %v997_v28 = vpack.c.bf16 %v1230_v25, %v1226_v23 }
 0x293   : > { %v1234_v29 = vpop.eup %1233  ;;  %1014 = vst [vmem:[%s1651_s9 + $0x8] sm:$0xff] %v1002_v26   ;;  %v734_v30 = vadd.f32 1.0, %v1232_v27 }
 0x294   : > { %v1236_v31 = vpop.eup %1235  ;;  %998 = vst [vmem:[%s1651_s9] sm:$0xff] %v997_v28   ;;  %v732_v32 = vadd.f32 1.0, %v1234_v29 }
 0x295   : > { %v1238_v33 = vpop.eup %1237  ;;  %1239 = vrcp.f32 %v734_v30  ;;  %v735_v34 = vadd.f32 1.0, %v1236_v31 }
 0x296   : > { %1241 = vrcp.f32 %v732_v32  ;;  %v733_v35 = vadd.f32 1.0, %v1238_v33 }
 0x297   : > { %1243 = vrcp.f32 %v735_v34 }
 0x298   : > { %1245 = vrcp.f32 %v733_v35 }
 0x29f   : > { %v1240_v36 = vpop.eup %1239  ;;  %799 = sbr.rel (!%p1741_p9) target bundleno = 706 (0x2c2), region = 56 }
 0x2a0   : > { %v1242_v37 = vpop.eup %1241 }
 0x2a1   : > { %v1244_v38 = vpop.eup %1243 }
 0x2a2   : > { %v1246_v39 = vpop.eup %1245  ;;  %v1012_v40 = vpack.c.bf16 %v1244_v38, %v1240_v36 }
 0x2a3   : > { %v1007_v41 = vpack.c.bf16 %v1246_v39, %v1242_v37 }
 0x2a4   : > { %1016 = vst [vmem:[%s1651_s9 + $0x18] sm:$0xff] %v1012_v40  }
 0x2a5   : > { %1015 = vst [vmem:[%s1651_s9 + $0x10] sm:$0xff] %v1007_v41  }
 0x2a6   : > { %s1751_s11 = smov (!%p802_p10, %s801_s11), 8 }
 0x2a7   : > { %s1661_s28 = sshll.u32 %s1751_s11, 6 }
 0x2a8   : > { %s806_s23 = ssub.s32 512, %s1661_s28 }
 0x2a9   : > { %807 = vsyncadd %s793_s17, %s806_s23  ;;  %p976_p1 = scmp.ne.s32.totalorder %s1661_s28, 0  ;;  %s993_s30 = sshll.u32 %s1464_s22, 9 }
 0x2aa   : > { %s1671_s14 = scalar_lea.hbm %s1725_s5, %s993_s30  ;;  %s812_s15 = sshll.u32 %s1651_s9, 4  ;;  %s1674_s15 = int_to_ptr.vmem [resolvable:$true] %s812_s15 }
 0x2ab   : > { %s1331_s16 = scalar_lea.vmem %s1674_s15, %s1661_s28  ;;  %s1410_s29 = smov [#allocation8]  }
 0x2ac   : > { %p1332_p3 = scmp.ne.s32.totalorder %s1674_s15, %s1331_s16  ;;  %s1335_s7 = sshll.u32 %s1410_s29, 4  ;;  %s1336_s7 = int_to_ptr.vmem [resolvable:$false] %s1335_s7 }
 0x2ad   : > { %s1337_s22 = scalar_lea.vmem %s1336_s7, 1024  ;;  %p1338_p11 = scmp.lt.s32.totalorder %s1674_s15, %s1336_s7 }
 0x2ae   : > { %p1333_p5 = pnand %p1332_p3, %p976_p1  ;;  %p1339_p13 = scmp.lt.s32.totalorder %s1337_s22, %s1331_s16 }
 0x2b0   : > { %p1334_p6 = pneg %p1333_p5  ;;  %p1340_p0 = por %p1339_p13, %p1338_p11 }
 0x2b2   : > { %p1341_p12 = pnand %p1340_p0, %p1334_p6 }
 0x2b4   : > { %1344 = shalt.err (!%p1341_p12)
}
 0x2b5   : > { %s1345_s10 = scalar_lea.hbm %s1671_s14, %s1661_s28  ;;  %s1349_s9 = scalar_lea.hbm %s1725_s5, 832 }
 0x2b6   : > { %p1346_p7 = scmp.ne.s32.totalorder %s1671_s14, %s1345_s10  ;;  %p1350_p9 = scmp.lt.u32.totalorder %s1671_s14, %s1725_s5 }
 0x2b7   : > { %p1351_p10 = scmp.lt.u32.totalorder %s1349_s9, %s1345_s10  ;;  %p1353_p5 = scmp.lt.u32.totalorder %s1345_s10, %s1671_s14 }
 0x2b8   : > { %p1347_p2 = pnand %p1346_p7, %p976_p1 }
 0x2b9   : > { %p1352_p3 = por %p1351_p10, %p1350_p9 }
 0x2ba   : > { %p1348_p8 = pneg %p1347_p2 }
 0x2bb   : > { %p1354_p6 = por %p1353_p5, %p1352_p3 }
 0x2bd   : > { %p1355_p11 = pnand %p1354_p6, %p1348_p8 }
 0x2bf   : > { %1358 = shalt.err (!%p1355_p11)
}
 0x2c0   : > { %s1411_s23 = smov 64   ;;  %s1412_s30 = smov 4  }
 0x2c1   : > { %818 = dma.vmem_to_hbm [thread:$0]  (%p976_p1), %s1674_s15, %s1661_s28, %s1671_s14, %s793_s17, %s1411_s23, %s1411_s23, %s1412_s30  }
 0x2c2 PF: > { %s827_s25 = sand.u32 1, %s1389_s18   ;;  %p1742_p13 = scmp.ne.s32.totalorder %s1733_s6, 0 }
 0x2c3   : > { %s828_s27 = scalar_lea.sflag [#allocation4], %s827_s25 }
 0x2c4   : > { %p1111_p0 = pnand %p908_p4, %p1742_p13 }
 0x2c6   : > { %1384 = dma.done.wait (!%p1111_p0), %s828_s27, 512  }
 0x2c7   : > { %1386 = vsyncadd (!%p1111_p0), %s828_s27, 4294966784  ;;  %s1743_s16 = sld [smem:[#allocation12_spill]]  ;;  %p19_p12 = scmp.ge.s32.totalorder %s1468_s24, 4  }
 0x2c8   : > { %s1744_s18 = smov %s1393_s19  ;;  %s1745_s19 = smov %s1397_s20 }
 0x2c9   : > { %s1747_s21 = smov %s1468_s24  ;;  %21 = sbr.rel (!%p19_p12) target bundleno = 6 (0x6), region = 93 }
 0x2cd   : > { %s1746_s20 = smov %s1743_s16 }
 0x2d0   :  { %833 = vsyncpa [#allocation3], 1 }
 0x2d1   :  { %835 = vsyncpa [#allocation3 + $0x1], 1 }
 0x2d2   :  { %836 = vsyncpa [#allocation6], 1 }
 0x2d3   :  { %837 = vsyncpa [#allocation4], 1 }
 0x2d4   :  { %839 = vsyncpa [#allocation4 + $0x1], 1 }

</bundles_post_ra>
